<compile_context>
chip_gen: v7x
topology: tpu7x:2x2x1
jax: 0.10.0
libtpu: 0.0.40
codegen_flags: <defaults>
</compile_context>

<pallas_src>
from functools import partial

import jax
import jax.numpy as jnp
import numpy as np
from jax.experimental import pallas as pl
from jax.experimental.pallas import tpu as pltpu

_LANE = 128


def _round_up(x, m):
    return ((x + m - 1) // m) * m


def _vmem_limits():
    """(working-set budget, scoped vmem_limit_bytes), generation-aware."""
    try:
        cap = int(getattr(pltpu.get_tpu_info(), "vmem_capacity_bytes"))
    except Exception:
        cap = 64 * 1024 * 1024          # conservative fallback (v7x per-core)
    budget = cap // 2                   # v5e/v6e: 64 MiB, v7x: 32 MiB
    limit = min((cap * 3) // 4, 96 * 1024 * 1024)   # v5e/v6e: 96, v7x: 48 MiB
    return budget, limit


def _choose_bt(batch, per_elem_bytes, resident_bytes, budget_bytes, sublane_unit):
    """Largest divisor of `batch` whose working set fits the budget.

    Prefers divisors whose blocked sublane dim (bt * sublane_unit) is a
    multiple of 8 (or the full batch) to keep blocks tile-aligned.  No
    "force >= 2 grid steps" fallback: extra tiny steps are pure overhead on
    single-TC chips and gain nothing at these per-step sizes on v7x.
    """
    avail = max(budget_bytes - resident_bytes, per_elem_bytes)
    cap = max(1, avail // max(per_elem_bytes, 1))
    best_aligned, best_any = None, 1
    for d in range(1, batch + 1):
        if batch % d or d > cap:
            continue
        best_any = d
        if d == batch or (d * sublane_unit) % 8 == 0:
            best_aligned = d
    return best_aligned if best_aligned is not None else best_any


def _const_spec_factory(multi_step):
    """BlockSpec factory for grid-invariant (resident) inputs."""
    def make(shape):
        index_map = lambda g, _n=len(shape): (0,) * _n
        if multi_step:
            # Single-buffer the resident weights/bias (no wasted VMEM); fall
            # back silently if this JAX version lacks pipeline_mode.
            try:
                return pl.BlockSpec(shape, index_map, pipeline_mode=pl.Buffered(1))
            except TypeError:
                pass
        return pl.BlockSpec(shape, index_map)
    return make


# ----------------------------------------------------------------------------
# Path 1: fused Kronecker matmul (module-scale shapes)
# ----------------------------------------------------------------------------
def _fused_kernel(x_ref, m_ref, bias_ref, o_ref):
    # x_ref:    (bt, K)      flattened (N_in*F_in) rows, K-deep contraction
    # m_ref:    (K, C_pad)   Kronecker weight, zero-padded lanes (resident)
    # bias_ref: (1, C_pad)   fused bias, f32 (resident)
    # o_ref:    (bt, C_pad)
    acc = jnp.dot(x_ref[...], m_ref[...], preferred_element_type=jnp.float32)
    o_ref[...] = (acc + bias_ref[...]).astype(o_ref.dtype)


def _graphx_fused(x, w_mix, w_conv, b_mix, b_conv, compute_dtype, budget, vmem_limit):
    B, N_in, F_in = x.shape
    N_out, F_out = w_mix.shape[0], w_conv.shape[0]
    K = N_in * F_in
    C = N_out * F_out
    C_pad = _round_up(C, _LANE)

    # --- batch-invariant prep, hoisted to the wrapper (runs once) -----------
    # M[i*F_in+j, k*F_out+f] = w_mix[k,i] * w_conv[f,j]
    m = jnp.einsum('ki,fj->ijkf', w_mix, w_conv).reshape(K, C)
    m = jnp.pad(m, ((0, 0), (0, C_pad - C)))
    bias = (b_mix[:, None] * jnp.sum(w_conv, axis=1)[None, :]
            + b_conv[None, :]).astype(jnp.float32)                  # (N_out, F_out)
    bias = jnp.pad(bias.reshape(1, C), ((0, 0), (0, C_pad - C)))    # (1, C_pad)

    x2 = x.reshape(B, K)
    if compute_dtype is not None:
        x2 = x2.astype(compute_dtype)
        m = m.astype(compute_dtype)

    in_isz = np.dtype(x2.dtype).itemsize
    w_isz = np.dtype(m.dtype).itemsize
    out_isz = np.dtype(x.dtype).itemsize
    # Double-buffered x and output blocks + live f32 accumulator per element.
    per_elem = 2 * K * in_isz + 2 * C_pad * out_isz + C_pad * 4
    resident = 2 * (K * C_pad * w_isz + C_pad * 4)
    bt = _choose_bt(B, per_elem, resident, budget, sublane_unit=1)
    grid = B // bt
    const = _const_spec_factory(grid > 1)

    out = pl.pallas_call(
        _fused_kernel,
        out_shape=jax.ShapeDtypeStruct((B, C_pad), x.dtype),
        grid_spec=pl.GridSpec(
            grid=(grid,),
            in_specs=[
                pl.BlockSpec((bt, K), lambda g: (g, 0)),
                const((K, C_pad)),
                const((1, C_pad)),
            ],
            out_specs=pl.BlockSpec((bt, C_pad), lambda g: (g, 0)),
        ),
        compiler_params=pltpu.CompilerParams(
            dimension_semantics=("parallel",),
            vmem_limit_bytes=vmem_limit,
        ),
    )(x2, m, bias)

    return out[:, :C].reshape(B, N_out, F_out)


# ----------------------------------------------------------------------------
# Path 2: two-stage (projection first, then instance mixing) for large shapes
# ----------------------------------------------------------------------------
def _two_stage_kernel(x_ref, wct_ref, wmix_ref, bias_ref, o_ref, *, bt, n_in):
    # x_ref:    (bt*n_in, F_in)   flattened batch block (sublane-dense)
    # wct_ref:  (F_in,  F_pad)    W_conv^T, zero-padded lanes (resident)
    # wmix_ref: (N_out, N_in)     instance-mixing weights     (resident)
    # bias_ref: (N_out, F_pad)    fused bias, f32             (resident)
    # o_ref:    (bt, N_out, F_pad)
    y = jnp.dot(x_ref[...], wct_ref[...],
                preferred_element_type=jnp.float32)          # (bt*n_in, F_pad)
    wmix = wmix_ref[...]
    bias = bias_ref[...]
    # bt is kept small by the VMEM budget at production shapes, and the
    # per-b contraction depth (N_in) is large there, so these matmuls are
    # not fill-latency bound on this path.
    for b in range(bt):
        yb = y[b * n_in:(b + 1) * n_in, :]
        o_ref[b] = (jnp.dot(wmix, yb, preferred_element_type=jnp.float32)
                    + bias).astype(o_ref.dtype)


def _graphx_two_stage(x, w_mix, w_conv, b_mix, b_conv, compute_dtype, budget, vmem_limit):
    B, N_in, F_in = x.shape
    N_out, F_out = w_mix.shape[0], w_conv.shape[0]
    F_pad = _round_up(F_out, _LANE)

    w_conv_t = jnp.pad(w_conv.T, ((0, 0), (0, F_pad - F_out)))          # (F_in, F_pad)
    bias = (b_mix[:, None] * jnp.sum(w_conv, axis=1)[None, :]
            + b_conv[None, :]).astype(jnp.float32)
    bias = jnp.pad(bias, ((0, 0), (0, F_pad - F_out)))                  # (N_out, F_pad)

    x_flat = x.reshape(B * N_in, F_in)
    wmix = w_mix
    if compute_dtype is not None:
        x_flat = x_flat.astype(compute_dtype)
        w_conv_t = w_conv_t.astype(compute_dtype)
        wmix = wmix.astype(compute_dtype)

    in_isz = np.dtype(x_flat.dtype).itemsize
    w_isz = np.dtype(w_conv_t.dtype).itemsize
    out_isz = np.dtype(x.dtype).itemsize
    # Double-buffered x & out blocks + live f32 intermediate y + one f32 tile.
    per_elem = (2 * N_in * F_in * in_isz + 2 * N_out * F_pad * out_isz
                + N_in * F_pad * 4 + N_out * F_pad * 4)
    resident = 2 * ((F_in * F_pad + N_out * N_in) * w_isz + N_out * F_pad * 4)
    bt = _choose_bt(B, per_elem, resident, budget, sublane_unit=N_in)
    grid = B // bt
    const = _const_spec_factory(grid > 1)

    kernel = partial(_two_stage_kernel, bt=bt, n_in=N_in)
    out = pl.pallas_call(
        kernel,
        out_shape=jax.ShapeDtypeStruct((B, N_out, F_pad), x.dtype),
        grid_spec=pl.GridSpec(
            grid=(grid,),
            in_specs=[
                pl.BlockSpec((bt * N_in, F_in), lambda g: (g, 0)),
                const((F_in, F_pad)),
                const((N_out, N_in)),
                const((N_out, F_pad)),
            ],
            out_specs=pl.BlockSpec((bt, N_out, F_pad), lambda g: (g, 0, 0)),
        ),
        compiler_params=pltpu.CompilerParams(
            dimension_semantics=("parallel",),
            vmem_limit_bytes=vmem_limit,
        ),
    )(x_flat, w_conv_t, wmix, bias)

    # TODO(synk): at production shapes, pack (N_out, F_out) into the lane dim
    # so this writeback is lane-dense instead of F_out/F_pad sparse.
    return out[:, :, :F_out]


# ----------------------------------------------------------------------------
# Public entry point
# ----------------------------------------------------------------------------
def graphx_conv(x, w_mix, w_conv, b_mix, b_conv, *,
                compute_dtype=None, force_two_stage=False):
    """x: (B, N_in, F_in); w_mix: (N_out, N_in); w_conv: (F_out, F_in);
    b_mix: (N_out,); b_conv: (F_out,). Returns (B, N_out, F_out).

    compute_dtype: optional MXU operand dtype (e.g. jnp.bfloat16 on v6e/v7x);
    accumulation and the bias epilogue stay in f32, output keeps x.dtype.
    """
    budget, vmem_limit = _vmem_limits()
    B, N_in, F_in = x.shape
    N_out, F_out = w_mix.shape[0], w_conv.shape[0]
    K = N_in * F_in
    C_pad = _round_up(N_out * F_out, _LANE)
    w_isz = 2 if compute_dtype == jnp.bfloat16 else 4
    kron_bytes = K * C_pad * w_isz

    if force_two_stage or kron_bytes > budget // 8:
        return _graphx_two_stage(x, w_mix, w_conv, b_mix, b_conv,
                                 compute_dtype, budget, vmem_limit)
    return _graphx_fused(x, w_mix, w_conv, b_mix, b_conv,
                         compute_dtype, budget, vmem_limit)


def graphx_ref(x, w_mix, w_conv, b_mix, b_conv):
    out = jnp.einsum('bij,ki,hj->bkh', x, w_mix, w_conv)
    ones = jnp.ones((x.shape[-1],), x.dtype)
    out = out + jnp.einsum('k,j,ij->ki', b_mix, ones, w_conv) + b_conv
    return out


if __name__ == "__main__":
    # Small, module-consistent shapes.
    B = 2
    in_instances = 16    # input point-cloud resolution
    in_features = 32     # per-point feature size
    out_instances = 24   # output point-cloud resolution
    out_features = 8     # output per-point feature size

    key = jax.random.PRNGKey(0)
    k1, k2, k3, k4, k5 = jax.random.split(key, 5)

    x = jax.random.normal(k1, (B, in_instances, in_features), jnp.float32)
    w_mix = jax.random.normal(k2, (out_instances, in_instances), jnp.float32) * 0.1
    b_mix = jax.random.normal(k3, (out_instances,), jnp.float32) * 0.1
    w_conv = jax.random.normal(k4, (out_features, in_features), jnp.float32) * 0.1
    b_conv = jax.random.normal(k5, (out_features,), jnp.float32) * 0.1

    ref = graphx_ref(x, w_mix, w_conv, b_mix, b_conv)

    # Primary (fused Kronecker, K=512) path, f32 operands.
    out = jax.block_until_ready(graphx_conv(x, w_mix, w_conv, b_mix, b_conv))
    np.testing.assert_allclose(np.asarray(out), np.asarray(ref), rtol=1e-5, atol=1e-5)

    # Production-shape fallback (two-stage) path, exercised here for coverage.
    out2 = jax.block_until_ready(
        graphx_conv(x, w_mix, w_conv, b_mix, b_conv, force_two_stage=True))
    np.testing.assert_allclose(np.asarray(out2), np.asarray(ref), rtol=1e-5, atol=1e-5)

    # bf16 MXU-operand path (f32 accumulate / f32 epilogue), loose tolerance.
    out3 = jax.block_until_ready(
        graphx_conv(x, w_mix, w_conv, b_mix, b_conv, compute_dtype=jnp.bfloat16))
    np.testing.assert_allclose(np.asarray(out3), np.asarray(ref), rtol=5e-2, atol=5e-2)

    # TODO(synk): rank-factorized mixing (rank != None) folds into w_mix in the
    # wrapper (w_mix = w_mix2 @ w_mix1); non-identity activations are a single
    # VPU/EUP op on the f32 epilogue before the final cast.
    print("KERNEL_OK")
</pallas_src>

<mosaic_0001>
module attributes {stable_mosaic.version = 11 : i64} {
  func.func @_fused_kernel(%arg0: i32, %arg1: memref<2x512xf32, #tpu.memory_space<vmem>>, %arg2: memref<512x256xf32, #tpu.memory_space<vmem>>, %arg3: memref<1x256xf32, #tpu.memory_space<vmem>>, %arg4: memref<2x256xf32, #tpu.memory_space<vmem>>) attributes {dimension_semantics = [#tpu.dimension_semantics<parallel>], iteration_bounds = array<i64: 1>, scalar_prefetch = 0 : i64, scratch_operands = 0 : i64, tpu.core_type = #tpu.core_type<tc>, window_params = [{transform_indices = @transform_0, window_bounds = array<i64: 2, 512>}, {pipeline_mode = #tpu.pipeline_mode<synchronous>, transform_indices = @transform_1, window_bounds = array<i64: 512, 256>}, {pipeline_mode = #tpu.pipeline_mode<synchronous>, transform_indices = @transform_2, window_bounds = array<i64: 1, 256>}, {transform_indices = @transform_3, window_bounds = array<i64: 2, 256>}]} {
    %c0 = arith.constant 0 : index
    %c0_0 = arith.constant 0 : index
    %0 = vector.load %arg1[%c0, %c0_0] : memref<2x512xf32, #tpu.memory_space<vmem>>, vector<2x512xf32>
    %c0_1 = arith.constant 0 : index
    %c0_2 = arith.constant 0 : index
    %1 = vector.load %arg2[%c0_1, %c0_2] : memref<512x256xf32, #tpu.memory_space<vmem>>, vector<512x256xf32>
    %cst = arith.constant dense<0.000000e+00> : vector<2x256xf32>
    %2 = tpu.matmul %0, %1, %cst {dimension_numbers = #tpu.dot_dimension_numbers<[1], [0], [0], [1], [0, 0, 1, 1], [], []>} : vector<2x512xf32>, vector<512x256xf32>, vector<2x256xf32> -> vector<2x256xf32>
    %c0_3 = arith.constant 0 : index
    %c0_4 = arith.constant 0 : index
    %3 = vector.load %arg3[%c0_3, %c0_4] : memref<1x256xf32, #tpu.memory_space<vmem>>, vector<1x256xf32>
    %4 = vector.broadcast %3 : vector<1x256xf32> to vector<2x256xf32>
    %5 = arith.addf %2, %4 : vector<2x256xf32>
    %c0_5 = arith.constant 0 : index
    %c0_6 = arith.constant 0 : index
    %6 = vector.load %arg4[%c0_5, %c0_6] : memref<2x256xf32, #tpu.memory_space<vmem>>, vector<2x256xf32>
    tpu.vector_store %arg4[%c0_5, %c0_6], %5 {strides = array<i32>} : memref<2x256xf32, #tpu.memory_space<vmem>>, vector<2x256xf32>,
    return
  }
  func.func @transform_0(%arg0: i32) -> (i32, i32) {
    %c0_i32 = arith.constant 0 : i32
    %c0_i32_0 = arith.constant 0 : i32
    return %arg0, %c0_i32 : i32, i32
  }
  func.func @transform_1(%arg0: i32) -> (i32, i32) {
    %c0_i32 = arith.constant 0 : i32
    %c0_i32_0 = arith.constant 0 : i32
    %c0_i32_1 = arith.constant 0 : i32
    return %c0_i32, %c0_i32_0 : i32, i32
  }
  func.func @transform_2(%arg0: i32) -> (i32, i32) {
    %c0_i32 = arith.constant 0 : i32
    %c0_i32_0 = arith.constant 0 : i32
    %c0_i32_1 = arith.constant 0 : i32
    return %c0_i32, %c0_i32_0 : i32, i32
  }
  func.func @transform_3(%arg0: i32) -> (i32, i32) {
    %c0_i32 = arith.constant 0 : i32
    %c0_i32_0 = arith.constant 0 : i32
    return %arg0, %c0_i32 : i32, i32
  }
}

</mosaic_0001>

<bundles_post_ra>
// kernel: tpu_custom_call.1
= control target key start
LH: loop header
LB: loop body
LE: loop exit
PB: predicated region body
PF: predicated region fallthrough
CT: control target
= control target key end

     0   :  { %8 = vsyncpa [#allocation3], 0  ;;  %s673_s0 = inlined_call_operand.hbm [shape: f32[2,512], index: 0, kind: input, shape index: {}]   ;;  %s674_s1 = inlined_call_operand.hbm [shape: f32[512,256], index: 1, kind: input, shape index: {}]   ;;  %s675_s2 = inlined_call_operand.vmem [shape: f32[1,256], index: 2, kind: input, shape index: {}]   ;;  %s676_s3 = inlined_call_operand.hbm [shape: f32[2,256], index: 3, kind: output, shape index: {}]  }
   0x1   :  { %9 = vsyncpa [#allocation6], 0 }
   0x2   :  { %10 = vsyncpa [#allocation4], 0  ;;  %s586_s12 = smov [#allocation2]   ;;  %s587_s14 = smov [#allocation5]  }
   0x3   :  { %s17_s13 = sshll.u32 %s586_s12, 4  ;;  %s26_s15 = sshll.u32 %s587_s14, 4  ;;  %s18_s13 = int_to_ptr.vmem [resolvable:$true] %s17_s13  ;;  %s612_s15 = int_to_ptr.vmem [resolvable:$true] %s26_s15 }
   0x4   :  { %s514_s18 = scalar_lea.hbm %s673_s0, 128 }
   0x5   :  { %p515_p0 = scmp.ne.s32.totalorder %s673_s0, %s514_s18  ;;  %p518_p1 = scmp.lt.u32.totalorder %s514_s18, %s673_s0 }
   0x7   :  { %p520_p2 = pnand %p518_p1, %p515_p0 }
   0x9   :  { %523 = shalt.err (!%p520_p2)
}
   0xa   :  { %s524_s23 = scalar_lea.vmem %s18_s13, 128  ;;  %p529_p4 = scmp.lt.s32.totalorder %s18_s13, %s18_s13 }
   0xb   :  { %p525_p3 = scmp.ne.s32.totalorder %s18_s13, %s524_s23  ;;  %p530_p5 = scmp.lt.s32.totalorder %s524_s23, %s524_s23 }
   0xd   :  { %p531_p6 = por %p530_p5, %p529_p4 }
   0xf   :  { %p532_p7 = pnand %p531_p6, %p525_p3 }
  0x11   :  { %535 = shalt.err (!%p532_p7)
}
  0x12   :  { %20 = dma.hbm_to_vmem [thread:$0]  %s673_s0, 128, %s18_s13, [#allocation3]  }
  0x13   :  { %s536_s28 = scalar_lea.hbm %s674_s1, 16384 }
  0x14   :  { %p537_p8 = scmp.ne.s32.totalorder %s674_s1, %s536_s28  ;;  %p540_p9 = scmp.lt.u32.totalorder %s536_s28, %s674_s1 }
  0x16   :  { %p542_p10 = pnand %p540_p9, %p537_p8 }
  0x18   :  { %545 = shalt.err (!%p542_p10)
}
  0x19   :  { %s546_s6 = scalar_lea.vmem %s612_s15, 16384  ;;  %p551_p12 = scmp.lt.s32.totalorder %s612_s15, %s612_s15 }
  0x1a   :  { %p547_p11 = scmp.ne.s32.totalorder %s612_s15, %s546_s6  ;;  %p552_p13 = scmp.lt.s32.totalorder %s546_s6, %s546_s6 }
  0x1c   :  { %p553_p0 = por %p552_p13, %p551_p12 }
  0x1e   :  { %p554_p1 = pnand %p553_p0, %p547_p11 }
  0x20   :  { %557 = shalt.err (!%p554_p1)
}
  0x21   :  { %s588_s0 = smov 256   ;;  %s589_s7 = smov 16  }
  0x22   :  { %32 = dma.hbm_to_vmem [thread:$0]  %s674_s1, 16384, %s612_s15, [#allocation6], %s588_s0, %s588_s0, %s589_s7  }
  0x23   :  { %580 = dma.done.wait [#allocation3], 128  }
  0x24   :  { %581 = vsyncadd [#allocation3], 4294967168 }
  0x25   :  { %582 = dma.done.wait [#allocation6], 16384  }
  0x26   :  { %583 = vsyncadd [#allocation6], 4294950912  ;;  %v43_v0 = vld [vmem:[#allocation5 + $0x8] sm:$0xff]  ;;  %v45_v1 = vld [vmem:[#allocation5 + $0x18] sm:$0xff]  ;;  %s591_s11 = smov [#allocation7]  }
  0x27   :  { %v42_v2 = vld [vmem:[#allocation5] sm:$0xff]  ;;  %v375_v3 = vpack.c.bf16 %v45_v1, %v43_v0  ;;  %v44_v4 = vld [vmem:[#allocation5 + $0x10] sm:$0xff]  ;;  %v107_v5 = vld [vmem:[#allocation5 + $0x208] sm:$0xff]  ;;  %s364_s12 = sshll.u32 %s591_s11, 4  ;;  %s365_s12 = int_to_ptr.vmem [resolvable:$true] %s364_s12 }
  0x28   :  { %v109_v6 = vld [vmem:[#allocation5 + $0x218] sm:$0xff]  ;;  %v377_v7 = vpack.c.bf16 %v44_v4, %v42_v2  ;;  %v106_v9 = vld [vmem:[#allocation5 + $0x200] sm:$0xff]  ;;  %v108_v10 = vld [vmem:[#allocation5 + $0x210] sm:$0xff]  ;;  %s558_s13 = scalar_lea.vmem %s365_s12, 64  ;;  %p563_p3 = scmp.lt.s32.totalorder %s365_s12, %s365_s12 }
  0x29   :  { %v439_v8 = vpack.c.bf16 %v109_v6, %v107_v5  ;;  %v47_v11 = vld [vmem:[#allocation5 + $0x28] sm:$0xff]  ;;  %376 = vmatprep.subr.bf16.mxu1 %v375_v3  ;;  %v441_v12 = vpack.c.bf16 %v108_v10, %v106_v9  ;;  %v49_v13 = vld [vmem:[#allocation5 + $0x38] sm:$0xff]  ;;  %v46_v14 = vld [vmem:[#allocation5 + $0x20] sm:$0xff]  ;;  %p559_p2 = scmp.ne.s32.totalorder %s365_s12, %s558_s13  ;;  %p564_p4 = scmp.lt.s32.totalorder %s558_s13, %s558_s13 }
  0x2a   :  { %v48_v15 = vld [vmem:[#allocation5 + $0x30] sm:$0xff]  ;;  %378 = vmatpush1.bf16.msra.mxu1 %v377_v7  ;;  %v379_v16 = vpack.c.bf16 %v49_v13, %v47_v11  ;;  %v111_v18 = vld [vmem:[#allocation5 + $0x228] sm:$0xff]  ;;  %v113_v19 = vld [vmem:[#allocation5 + $0x238] sm:$0xff] }
  0x2b   :  { %440 = vmatprep.subr.bf16.mxu0 %v439_v8  ;;  %v381_v17 = vpack.c.bf16 %v48_v15, %v46_v14  ;;  %v110_v20 = vld [vmem:[#allocation5 + $0x220] sm:$0xff]  ;;  %v443_v21 = vpack.c.bf16 %v113_v19, %v111_v18  ;;  %v112_v22 = vld [vmem:[#allocation5 + $0x230] sm:$0xff]  ;;  %v51_v23 = vld [vmem:[#allocation5 + $0x48] sm:$0xff]  ;;  %p565_p5 = por %p564_p4, %p563_p3 }
  0x2c   :  { %442 = vmatpush1.bf16.msra.mxu0 %v441_v12  ;;  %v53_v24 = vld [vmem:[#allocation5 + $0x58] sm:$0xff]  ;;  %380 = vmatprep.subr.bf16.mxu1 %v379_v16  ;;  %v445_v25 = vpack.c.bf16 %v112_v22, %v110_v20  ;;  %v50_v27 = vld [vmem:[#allocation5 + $0x40] sm:$0xff]  ;;  %v52_v28 = vld [vmem:[#allocation5 + $0x50] sm:$0xff] }
  0x2d   :  { %v383_v26 = vpack.c.bf16 %v53_v24, %v51_v23  ;;  %v115_v29 = vld [vmem:[#allocation5 + $0x248] sm:$0xff]  ;;  %444 = vmatprep.subr.bf16.mxu0 %v443_v21  ;;  %v117_v30 = vld [vmem:[#allocation5 + $0x258] sm:$0xff]  ;;  %v114_v31 = vld [vmem:[#allocation5 + $0x240] sm:$0xff]  ;;  %v385_v33 = vpack.c.bf16 %v52_v28, %v50_v27  ;;  %p566_p6 = pnand %p565_p5, %p559_p2 }
  0x2e   :  { %v116_v32 = vld [vmem:[#allocation5 + $0x250] sm:$0xff]  ;;  %382 = vmatpush1.bf16.msra.mxu1 %v381_v17  ;;  %v447_v34 = vpack.c.bf16 %v117_v30, %v115_v29  ;;  %v55_v35 = vld [vmem:[#allocation5 + $0x68] sm:$0xff]  ;;  %v57_v36 = vld [vmem:[#allocation5 + $0x78] sm:$0xff] }
  0x2f   :  { %v54_v37 = vld [vmem:[#allocation5 + $0x60] sm:$0xff]  ;;  %384 = vmatprep.subr.bf16.mxu1 %v383_v26  ;;  %v449_v38 = vpack.c.bf16 %v116_v32, %v114_v31  ;;  %v387_v39 = vpack.c.bf16 %v57_v36, %v55_v35  ;;  %v56_v40 = vld [vmem:[#allocation5 + $0x70] sm:$0xff]  ;;  %v119_v41 = vld [vmem:[#allocation5 + $0x268] sm:$0xff] }
  0x30   :  { %446 = vmatpush1.bf16.msra.mxu0 %v445_v25  ;;  %v121_v42 = vld [vmem:[#allocation5 + $0x278] sm:$0xff]  ;;  %v118_v44 = vld [vmem:[#allocation5 + $0x260] sm:$0xff]  ;;  %v120_v45 = vld [vmem:[#allocation5 + $0x270] sm:$0xff]  ;;  %v389_v48 = vpack.c.bf16 %v56_v40, %v54_v37 }
  0x31   :  { %448 = vmatprep.subr.bf16.mxu0 %v447_v34  ;;  %v451_v43 = vpack.c.bf16 %v121_v42, %v119_v41  ;;  %v59_v46 = vld [vmem:[#allocation5 + $0x88] sm:$0xff]  ;;  %v61_v47 = vld [vmem:[#allocation5 + $0x98] sm:$0xff]  ;;  %v453_v51 = vpack.c.bf16 %v120_v45, %v118_v44  ;;  %v58_v53 = vld [vmem:[#allocation5 + $0x80] sm:$0xff] }
  0x32   :  { %386 = vmatpush1.bf16.msra.mxu1 %v385_v33  ;;  %v123_v49 = vld [vmem:[#allocation5 + $0x288] sm:$0xff]  ;;  %v125_v50 = vld [vmem:[#allocation5 + $0x298] sm:$0xff]  ;;  %v391_v52 = vpack.c.bf16 %v61_v47, %v59_v46  ;;  %v60_v54 = vld [vmem:[#allocation5 + $0x90] sm:$0xff]  ;;  %v172_v46 = vlaneseq  ;;  %v590_v47 = vmov 1983009808  }
  0x33   :  { %388 = vmatprep.subr.bf16.mxu1 %v387_v39  ;;  %v122_v55 = vld [vmem:[#allocation5 + $0x280] sm:$0xff]  ;;  %v455_v56 = vpack.c.bf16 %v125_v50, %v123_v49  ;;  %v124_v57 = vld [vmem:[#allocation5 + $0x290] sm:$0xff]  ;;  %v63_v58 = vld [vmem:[#allocation5 + $0xa8] sm:$0xff]  ;;  %v393_v62 = vpack.c.bf16 %v60_v54, %v58_v53 }
  0x34   :  { %450 = vmatpush1.bf16.msra.mxu0 %v449_v38  ;;  %v65_v59 = vld [vmem:[#allocation5 + $0xb8] sm:$0xff]  ;;  %v127_v60 = vld [vmem:[#allocation5 + $0x2a8] sm:$0xff]  ;;  %v457_v63 = vpack.c.bf16 %v124_v57, %v122_v55  ;;  %v62_v1 = vld [vmem:[#allocation5 + $0xa0] sm:$0xff] }
  0x35   :  { %452 = vmatprep.subr.bf16.mxu0 %v451_v43  ;;  %v129_v61 = vld [vmem:[#allocation5 + $0x2b8] sm:$0xff]  ;;  %v395_v0 = vpack.c.bf16 %v65_v59, %v63_v58  ;;  %v64_v2 = vld [vmem:[#allocation5 + $0xb0] sm:$0xff]  ;;  %v126_v3 = vld [vmem:[#allocation5 + $0x2a0] sm:$0xff] }
  0x36   :  { %390 = vmatpush1.bf16.msra.mxu1 %v389_v48  ;;  %v459_v4 = vpack.c.bf16 %v129_v61, %v127_v60  ;;  %v128_v5 = vld [vmem:[#allocation5 + $0x2b0] sm:$0xff]  ;;  %v67_v6 = vld [vmem:[#allocation5 + $0xc8] sm:$0xff]  ;;  %v69_v7 = vld [vmem:[#allocation5 + $0xd8] sm:$0xff]  ;;  %v397_v10 = vpack.c.bf16 %v64_v2, %v62_v1  ;;  %v185_v48 = vunpack.c.l.s4 %v590_v47  ;;  %v643_v61 = vshrl.u32 %v172_v46, 7 }
  0x37   :  { %392 = vmatprep.subr.bf16.mxu1 %v391_v52  ;;  %v131_v8 = vld [vmem:[#allocation5 + $0x2c8] sm:$0xff]  ;;  %v133_v9 = vld [vmem:[#allocation5 + $0x2d8] sm:$0xff]  ;;  %v461_v11 = vpack.c.bf16 %v128_v5, %v126_v3  ;;  %v399_v12 = vpack.c.bf16 %v69_v7, %v67_v6  ;;  %v66_v13 = vld [vmem:[#allocation5 + $0xc0] sm:$0xff] }
  0x38   :  { %454 = vmatpush1.bf16.msra.mxu0 %v453_v51  ;;  %v68_v14 = vld [vmem:[#allocation5 + $0xd0] sm:$0xff]  ;;  %v130_v15 = vld [vmem:[#allocation5 + $0x2c0] sm:$0xff]  ;;  %v463_v16 = vpack.c.bf16 %v133_v9, %v131_v8  ;;  %v71_v18 = vld [vmem:[#allocation5 + $0xe8] sm:$0xff] }
  0x39   :  { %456 = vmatprep.subr.bf16.mxu0 %v455_v56  ;;  %v132_v17 = vld [vmem:[#allocation5 + $0x2d0] sm:$0xff]  ;;  %v73_v19 = vld [vmem:[#allocation5 + $0xf8] sm:$0xff]  ;;  %v135_v20 = vld [vmem:[#allocation5 + $0x2e8] sm:$0xff]  ;;  %v401_v22 = vpack.c.bf16 %v68_v14, %v66_v13 }
  0x3a   :  { %394 = vmatpush1.bf16.msra.mxu1 %v393_v62  ;;  %v137_v21 = vld [vmem:[#allocation5 + $0x2f8] sm:$0xff]  ;;  %v465_v23 = vpack.c.bf16 %v132_v17, %v130_v15  ;;  %v403_v24 = vpack.c.bf16 %v73_v19, %v71_v18  ;;  %v70_v25 = vld [vmem:[#allocation5 + $0xe0] sm:$0xff]  ;;  %v72_v26 = vld [vmem:[#allocation5 + $0xf0] sm:$0xff]  ;;  %v186_v62 = vunpack.c.0.s8 %v185_v48 }
  0x3b   :  { %396 = vmatprep.subr.bf16.mxu1 %v395_v0  ;;  %v134_v27 = vld [vmem:[#allocation5 + $0x2e0] sm:$0xff]  ;;  %v467_v28 = vpack.c.bf16 %v137_v21, %v135_v20  ;;  %v136_v29 = vld [vmem:[#allocation5 + $0x2f0] sm:$0xff]  ;;  %v75_v30 = vld [vmem:[#allocation5 + $0x108] sm:$0xff]  ;;  %v405_v34 = vpack.c.bf16 %v72_v26, %v70_v25 }
  0x3c   :  { %458 = vmatpush1.bf16.msra.mxu0 %v457_v63  ;;  %v77_v31 = vld [vmem:[#allocation5 + $0x118] sm:$0xff]  ;;  %v139_v32 = vld [vmem:[#allocation5 + $0x308] sm:$0xff]  ;;  %v469_v35 = vpack.c.bf16 %v136_v29, %v134_v27  ;;  %v74_v37 = vld [vmem:[#allocation5 + $0x100] sm:$0xff] }
  0x3d   :  { %460 = vmatprep.subr.bf16.mxu0 %v459_v4  ;;  %v141_v33 = vld [vmem:[#allocation5 + $0x318] sm:$0xff]  ;;  %v407_v36 = vpack.c.bf16 %v77_v31, %v75_v30  ;;  %v76_v38 = vld [vmem:[#allocation5 + $0x110] sm:$0xff]  ;;  %v138_v39 = vld [vmem:[#allocation5 + $0x300] sm:$0xff] }
  0x3e   :  { %398 = vmatpush1.bf16.msra.mxu1 %v397_v10  ;;  %v471_v40 = vpack.c.bf16 %v141_v33, %v139_v32  ;;  %v140_v41 = vld [vmem:[#allocation5 + $0x310] sm:$0xff]  ;;  %v79_v42 = vld [vmem:[#allocation5 + $0x128] sm:$0xff]  ;;  %v81_v43 = vld [vmem:[#allocation5 + $0x138] sm:$0xff]  ;;  %v409_v49 = vpack.c.bf16 %v76_v38, %v74_v37 }
  0x3f   :  { %400 = vmatprep.subr.bf16.mxu1 %v399_v12  ;;  %v143_v44 = vld [vmem:[#allocation5 + $0x328] sm:$0xff]  ;;  %v145_v45 = vld [vmem:[#allocation5 + $0x338] sm:$0xff]  ;;  %v473_v50 = vpack.c.bf16 %v140_v41, %v138_v39  ;;  %v411_v51 = vpack.c.bf16 %v81_v43, %v79_v42  ;;  %v78_v52 = vld [vmem:[#allocation5 + $0x120] sm:$0xff] }
  0x40   :  { %462 = vmatpush1.bf16.msra.mxu0 %v461_v11  ;;  %v80_v53 = vld [vmem:[#allocation5 + $0x130] sm:$0xff]  ;;  %v142_v54 = vld [vmem:[#allocation5 + $0x320] sm:$0xff]  ;;  %v475_v55 = vpack.c.bf16 %v145_v45, %v143_v44  ;;  %v83_v57 = vld [vmem:[#allocation5 + $0x148] sm:$0xff]  ;;  %v189_v11 = vsub.s32 %v186_v62, %v643_v61 }
  0x41   :  { %464 = vmatprep.subr.bf16.mxu0 %v463_v16  ;;  %v144_v56 = vld [vmem:[#allocation5 + $0x330] sm:$0xff]  ;;  %v85_v58 = vld [vmem:[#allocation5 + $0x158] sm:$0xff]  ;;  %v147_v59 = vld [vmem:[#allocation5 + $0x348] sm:$0xff]  ;;  %v413_v63 = vpack.c.bf16 %v80_v53, %v78_v52 }
  0x42   :  { %402 = vmatpush1.bf16.msra.mxu1 %v401_v22  ;;  %v149_v60 = vld [vmem:[#allocation5 + $0x358] sm:$0xff]  ;;  %v477_v0 = vpack.c.bf16 %v144_v56, %v142_v54  ;;  %v415_v1 = vpack.c.bf16 %v85_v58, %v83_v57  ;;  %v82_v2 = vld [vmem:[#allocation5 + $0x140] sm:$0xff]  ;;  %v84_v3 = vld [vmem:[#allocation5 + $0x150] sm:$0xff] }
  0x43   :  { %404 = vmatprep.subr.bf16.mxu1 %v403_v24  ;;  %v146_v4 = vld [vmem:[#allocation5 + $0x340] sm:$0xff]  ;;  %v479_v5 = vpack.c.bf16 %v149_v60, %v147_v59  ;;  %v148_v6 = vld [vmem:[#allocation5 + $0x350] sm:$0xff]  ;;  %v87_v7 = vld [vmem:[#allocation5 + $0x168] sm:$0xff]  ;;  %v417_v12 = vpack.c.bf16 %v84_v3, %v82_v2 }
  0x44   :  { %466 = vmatpush1.bf16.msra.mxu0 %v465_v23  ;;  %v89_v8 = vld [vmem:[#allocation5 + $0x178] sm:$0xff]  ;;  %v151_v9 = vld [vmem:[#allocation5 + $0x368] sm:$0xff]  ;;  %v86_v13 = vld [vmem:[#allocation5 + $0x160] sm:$0xff]  ;;  %v481_v14 = vpack.c.bf16 %v148_v6, %v146_v4 }
  0x45   :  { %468 = vmatprep.subr.bf16.mxu0 %v467_v28  ;;  %v153_v10 = vld [vmem:[#allocation5 + $0x378] sm:$0xff]  ;;  %v419_v15 = vpack.c.bf16 %v89_v8, %v87_v7  ;;  %v88_v16 = vld [vmem:[#allocation5 + $0x170] sm:$0xff]  ;;  %v150_v17 = vld [vmem:[#allocation5 + $0x360] sm:$0xff] }
  0x46   :  { %406 = vmatpush1.bf16.msra.mxu1 %v405_v34  ;;  %v152_v18 = vld [vmem:[#allocation5 + $0x370] sm:$0xff]  ;;  %v483_v19 = vpack.c.bf16 %v153_v10, %v151_v9  ;;  %v91_v20 = vld [vmem:[#allocation5 + $0x188] sm:$0xff]  ;;  %v93_v21 = vld [vmem:[#allocation5 + $0x198] sm:$0xff]  ;;  %v421_v27 = vpack.c.bf16 %v88_v16, %v86_v13  ;;  %v174_v13 = vsub.s32 0, %v643_v61 }
  0x47   :  { %408 = vmatprep.subr.bf16.mxu1 %v407_v36  ;;  %v41_v22 = vld [vmem:[#allocation2] sm:$0xff]  ;;  %v155_v23 = vld [vmem:[#allocation5 + $0x388] sm:$0xff]  ;;  %v485_v28 = vpack.c.bf16 %v152_v18, %v150_v17  ;;  %v423_v29 = vpack.c.bf16 %v93_v21, %v91_v20  ;;  %v90_v30 = vld [vmem:[#allocation5 + $0x180] sm:$0xff] }
  0x48   :  { %470 = vmatpush1.bf16.msra.mxu0 %v469_v35  ;;  %v157_v24 = vld [vmem:[#allocation5 + $0x398] sm:$0xff]  ;;  %v646_v25 = vrot.slane %v41_v22, %v189_v11  ;;  %v183_v26 = vcombine.high %v41_v22, %v41_v22  ;;  %v92_v31 = vld [vmem:[#allocation5 + $0x190] sm:$0xff]  ;;  %v154_v32 = vld [vmem:[#allocation5 + $0x380] sm:$0xff] }
  0x49   :  { %472 = vmatprep.subr.bf16.mxu0 %v471_v40  ;;  %v487_v35 = vpack.c.bf16 %v157_v24, %v155_v23  ;;  %v156_v36 = vld [vmem:[#allocation5 + $0x390] sm:$0xff]  ;;  %v95_v37 = vld [vmem:[#allocation5 + $0x1a8] sm:$0xff]  ;;  %v97_v38 = vld [vmem:[#allocation5 + $0x1b8] sm:$0xff]  ;;  %v425_v42 = vpack.c.bf16 %v92_v31, %v90_v30 }
  0x4a   :  { %410 = vmatpush1.bf16.msra.mxu1 %v409_v49  ;;  %v198_v33 = vcombine.high %v646_v25, %v646_v25  ;;  %v650_v34 = vrot.slane %v183_v26, %v189_v11  ;;  %v159_v39 = vld [vmem:[#allocation5 + $0x3a8] sm:$0xff]  ;;  %v161_v40 = vld [vmem:[#allocation5 + $0x3b8] sm:$0xff]  ;;  %v489_v43 = vpack.c.bf16 %v156_v36, %v154_v32  ;;  %v427_v44 = vpack.c.bf16 %v97_v38, %v95_v37  ;;  %v94_v45 = vld [vmem:[#allocation5 + $0x1a0] sm:$0xff] }
  0x4b   :  { %412 = vmatprep.subr.bf16.mxu1 %v411_v51  ;;  %v96_v46 = vld [vmem:[#allocation5 + $0x1b0] sm:$0xff]  ;;  %v158_v47 = vld [vmem:[#allocation5 + $0x3a0] sm:$0xff]  ;;  %v491_v48 = vpack.c.bf16 %v161_v40, %v159_v39  ;;  %v101_v51 = vld [vmem:[#allocation5 + $0x1d8] sm:$0xff] }
  0x4c   :  { %474 = vmatpush1.bf16.msra.mxu0 %v473_v50  ;;  %268 = vmatprep.mubr.f32.mxu1 %v198_v33  ;;  %v199_v41 = vcombine.high %v650_v34, %v650_v34  ;;  %v160_v49 = vld [vmem:[#allocation5 + $0x3b0] sm:$0xff]  ;;  %v99_v50 = vld [vmem:[#allocation5 + $0x1c8] sm:$0xff]  ;;  %v165_v53 = vld [vmem:[#allocation5 + $0x3d8] sm:$0xff]  ;;  %v429_v54 = vpack.c.bf16 %v96_v46, %v94_v45 }
  0x4d   :  { %476 = vmatprep.subr.bf16.mxu0 %v475_v55  ;;  %v163_v52 = vld [vmem:[#allocation5 + $0x3c8] sm:$0xff]  ;;  %v493_v55 = vpack.c.bf16 %v160_v49, %v158_v47  ;;  %v431_v56 = vpack.c.bf16 %v101_v51, %v99_v50  ;;  %v98_v57 = vld [vmem:[#allocation5 + $0x1c0] sm:$0xff]  ;;  %v100_v58 = vld [vmem:[#allocation5 + $0x1d0] sm:$0xff] }
  0x4e   :  { %414 = vmatpush1.bf16.msra.mxu1 %v413_v63  ;;  %339 = vmatprep.mubr.f32.mxu0 %v199_v41  ;;  %v162_v59 = vld [vmem:[#allocation5 + $0x3c0] sm:$0xff]  ;;  %v495_v60 = vpack.c.bf16 %v165_v53, %v163_v52  ;;  %v164_v62 = vld [vmem:[#allocation5 + $0x3d0] sm:$0xff]  ;;  %v103_v63 = vld [vmem:[#allocation5 + $0x1e8] sm:$0xff]  ;;  %v433_v3 = vpack.c.bf16 %v100_v58, %v98_v57 }
  0x4f   :  { %416 = vmatprep.subr.bf16.mxu1 %v415_v1  ;;  %v167_v1 = vld [vmem:[#allocation5 + $0x3e8] sm:$0xff]  ;;  %v169_v2 = vld [vmem:[#allocation5 + $0x3f8] sm:$0xff]  ;;  %v497_v4 = vpack.c.bf16 %v164_v62, %v162_v59  ;;  %v102_v6 = vld [vmem:[#allocation5 + $0x1e0] sm:$0xff] }
  0x50   :  { %478 = vmatpush1.bf16.msra.mxu0 %v477_v0  ;;  %v105_v0 = vld [vmem:[#allocation5 + $0x1f8] sm:$0xff]  ;;  %v104_v7 = vld [vmem:[#allocation5 + $0x1f0] sm:$0xff]  ;;  %v499_v8 = vpack.c.bf16 %v169_v2, %v167_v1  ;;  %v166_v9 = vld [vmem:[#allocation5 + $0x3e0] sm:$0xff] }
  0x51   :  { %480 = vmatprep.subr.bf16.mxu0 %v479_v5  ;;  %v435_v5 = vpack.c.bf16 %v105_v0, %v103_v63  ;;  %v168_v10 = vld [vmem:[#allocation5 + $0x3f0] sm:$0xff]  ;;  %v437_v11 = vpack.c.bf16 %v104_v7, %v102_v6 }
  0x52   :  { %418 = vmatpush1.bf16.msra.mxu1 %v417_v12  ;;  %v501_v12 = vpack.c.bf16 %v168_v10, %v166_v9 }
  0x53   :  { %420 = vmatprep.subr.bf16.mxu1 %v419_v15  ;;  %v178_v15 = vsub.s32 1, %v643_v61 }
  0x54   :  { %482 = vmatpush1.bf16.msra.mxu0 %v481_v14  ;;  %v170_v14 = vld [vmem:[%s675_s2] sm:$0x3] }
  0x55   :  { %484 = vmatprep.subr.bf16.mxu0 %v483_v19  ;;  %v175_v16 = vrot.slane %v170_v14, %v174_v13  ;;  %v179_v17 = vrot.slane %v170_v14, %v178_v15 }
  0x56   :  { %422 = vmatpush1.bf16.msra.mxu1 %v421_v27 }
  0x57   :  { %424 = vmatprep.subr.bf16.mxu1 %v423_v29 }
  0x58   :  { %486 = vmatpush1.bf16.msra.mxu0 %v485_v28 }
  0x59   :  { %488 = vmatprep.subr.bf16.mxu0 %v487_v35 }
  0x5a   :  { %426 = vmatpush1.bf16.msra.mxu1 %v425_v42 }
  0x5b   :  { %428 = vmatprep.subr.bf16.mxu1 %v427_v44 }
  0x5c   :  { %490 = vmatpush1.bf16.msra.mxu0 %v489_v43 }
  0x5d   :  { %492 = vmatprep.subr.bf16.mxu0 %v491_v48 }
  0x5e   :  { %430 = vmatpush1.bf16.msra.mxu1 %v429_v54 }
  0x5f   :  { %432 = vmatprep.subr.bf16.mxu1 %v431_v56 }
  0x60   :  { %494 = vmatpush1.bf16.msra.mxu0 %v493_v55 }
  0x61   :  { %496 = vmatprep.subr.bf16.mxu0 %v495_v60 }
  0x62   :  { %434 = vmatpush1.bf16.msra.mxu1 %v433_v3 }
  0x63   :  { %436 = vmatprep.subr.bf16.mxu1 %v435_v5 }
  0x64   :  { %498 = vmatpush1.bf16.msra.mxu0 %v497_v4 }
  0x65   :  { %500 = vmatprep.subr.bf16.mxu0 %v499_v8 }
  0x66   :  { %438 = vmatpush1.bf16.msra.mxu1 %v437_v11 }
  0x68   :  { %502 = vmatpush1.bf16.msra.mxu0 %v501_v12 }
  0x69   :  { %269 = vmatmul.mubr.f32.vlgmr.msra.gmra.mrb[0].mxu1 %v646_v25 }
  0x6b   :  { %340 = vmatmul.mubr.f32.vlgmr.msra.gmra.mrb[0].mxu0 %v650_v34 }
 0x13c   :  { %v270_v18 = vpop.f32.mrb[0].mxu1 }
 0x13d   :  { %v271_v19 = vadd.f32 %v270_v18, %v175_v16  ;;  %v272_v20 = vpop.f32.mrb[1].mxu1 }
 0x13e   :  { %v341_v21 = vpop.f32.mrb[0].mxu0  ;;  %v273_v22 = vadd.f32 %v272_v20, %v179_v17 }
 0x13f   :  { %v343_v23 = vpop.f32.mrb[1].mxu0  ;;  %v342_v24 = vadd.f32 %v341_v21, %v271_v19 }
 0x140   :  { %v344_v25 = vadd.f32 %v343_v23, %v273_v22 }
 0x142   :  { %v348_v26 = vcombine.low %v342_v24, %v344_v25 }
 0x144   :  { %374 = vst.sshfl [vmem:[#allocation7] sm:$0x33 pattern:$0x76325410] %v348_v26 }
 0x145   :  { %569 = shalt.err (!%p566_p6)
}
 0x146   :  { %s570_s15 = scalar_lea.hbm %s676_s3, 64 }
 0x147   :  { %p571_p7 = scmp.ne.s32.totalorder %s676_s3, %s570_s15  ;;  %p574_p8 = scmp.lt.u32.totalorder %s570_s15, %s676_s3 }
 0x149   :  { %p576_p9 = pnand %p574_p8, %p571_p7 }
 0x14b   :  { %579 = shalt.err (!%p576_p9)
}
 0x14c   :  { %367 = dma.vmem_to_hbm [thread:$0]  %s365_s12, 64, %s676_s3, [#allocation4]  }
 0x14d   :  { %584 = dma.done.wait [#allocation4], 64  }
 0x14e   :  { %585 = vsyncadd [#allocation4], 4294967232 }
 0x14f   :  { %371 = vsyncpa [#allocation3], 1 }
 0x150   :  { %372 = vsyncpa [#allocation6], 1 }
 0x151   :  { %373 = vsyncpa [#allocation4], 1 }

</bundles_post_ra>
